<compile_context>
chip_gen: v7x
topology: tpu7x:2x2x1
jax: 0.10.0
libtpu: 0.0.40
codegen_flags: <defaults>
</compile_context>

<pallas_src>
import functools
import math

import jax
import jax.numpy as jnp
from jax.experimental import pallas as pl
from jax.experimental.pallas import tpu as pltpu


def _round_up(x, m):
    return ((x + m - 1) // m) * m


def _apply_activation(y, activation):
    if activation == "identity":
        return y
    if activation == "relu":
        return jnp.maximum(y, 0.0)
    if activation == "tanh":
        return jnp.tanh(y)
    if activation == "sigmoid":
        return jax.nn.sigmoid(y)
    if activation == "leaky_relu":
        return jnp.where(y > 0, y, 0.01 * y)
    raise ValueError(f"unsupported activation: {activation}")


def _num_tensorcores():
    """Best-effort TensorCores-per-chip query (v7x = 2, v5e/v6e = 1)."""
    try:
        info = pltpu.get_tpu_info()
        for attr in ("num_cores", "core_count", "num_tensorcores",
                     "tensorcore_count", "cores_per_chip"):
            v = getattr(info, attr, None)
            if isinstance(v, int) and v > 0:
                return v
    except Exception:
        pass
    try:
        v = getattr(jax.devices()[0], "num_cores", None)
        if isinstance(v, int) and v > 0:
            return v
    except Exception:
        pass
    return 1


def _mlp_fused_kernel(*refs, activations):
    """refs = (x_ref, w0, b0, w1, b1, ..., o_ref).

    Whole MLP on one batch tile; intermediates stay in vregs/VMEM.
    """
    x_ref = refs[0]
    o_ref = refs[-1]
    param_refs = refs[1:-1]

    h = x_ref[...].astype(jnp.float32)
    for j, act in enumerate(activations):
        w = param_refs[2 * j][...]
        b = param_refs[2 * j + 1][...]          # (1, n) -> broadcast over rows
        h = jnp.dot(h, w, preferred_element_type=jnp.float32) + b
        h = _apply_activation(h, act)
    o_ref[...] = h.astype(o_ref.dtype)


def _choose_tile_m(m, num_cores, per_row_bytes, cap=512):
    """Batch tile: as large as the mem-bound roofline wants (cap 512),
    bounded by a VMEM budget safe on every generation, preferring a tile
    that divides the batch so no padded copy of x is needed."""
    budget = 40 << 20  # conservative: fits v7x 64 MiB physical VMEM easily
    max_rows = max(8, (budget // max(per_row_bytes, 1)) // 8 * 8)
    cap = max(8, min(cap, max_rows))

    m8 = _round_up(m, 8)
    tile = None
    if m % 8 == 0:
        for t in range(min(cap, m), 7, -8):     # largest divisor of m, mult of 8
            if m % t == 0:
                tile = t
                break
    if tile is None:
        tile = min(cap, m8)                     # rare path: needs small row pad

    # Only on 2-TC chips (v7x) is splitting a single-step grid worthwhile.
    if num_cores >= 2:
        steps = -(-m8 // tile)
        if steps < num_cores:
            half = tile // 2
            if half >= 8 and half % 8 == 0:
                tile = half
    return tile


def plain_mlp_forward(x, params, activations, num_cores=1):
    """Fused forward. params[j] = (W_j, b_j) already kernel-ready:
    W_j shape (in_j, out_j) (hidden dims padded to 128), b_j shape (1, out_j)."""
    m, k0 = x.shape
    n_layers = len(params)
    assert n_layers == len(activations) and n_layers >= 1
    n_last = params[-1][0].shape[1]
    max_width = max([k0, n_last] + [w.shape[1] for w, _ in params])

    # --- batch tiling (no x pad in the common case) --------------------------
    per_row_bytes = 4 * (2 * (k0 + n_last) + 2 * max_width)
    tile_m = _choose_tile_m(m, num_cores, per_row_bytes)
    m_pad = _round_up(m, tile_m)
    if m_pad != m:
        x = jnp.pad(x, ((0, m_pad - m), (0, 0)))
    grid = (m_pad // tile_m,)

    # --- block specs ---------------------------------------------------------
    in_specs = [pl.BlockSpec((tile_m, k0), lambda i: (i, 0))]        # x tile
    flat_inputs = [x]
    for w, b2d in params:
        kj, nj = w.shape
        in_specs.append(pl.BlockSpec((kj, nj), lambda i: (0, 0)))    # full W
        in_specs.append(pl.BlockSpec((1, nj), lambda i: (0, 0)))     # bias row
        flat_inputs.extend([w, b2d])
    # Output block last dim == full array dim (legal even if < 128); keeping
    # the output narrow avoids 8x HBM write traffic for small n_last.
    out_spec = pl.BlockSpec((tile_m, n_last), lambda i: (i, 0))

    # --- advisory cost estimate ----------------------------------------------
    flops = 0
    transcendentals = 0
    bytes_accessed = 4 * (m_pad * k0 + m_pad * n_last)
    for (w, _), act in zip(params, activations):
        kj, nj = w.shape
        flops += 2 * m_pad * kj * nj
        bytes_accessed += 4 * (kj * nj + nj)
        if act in ("tanh", "sigmoid"):
            transcendentals += m_pad * nj
    cost = pl.CostEstimate(flops=flops, transcendentals=transcendentals,
                           bytes_accessed=bytes_accessed)

    # --- explicit VMEM limit covering double-buffered tiles + params ---------
    param_bytes = sum(4 * (w.size + b.size) for w, b in params)
    vmem_need = (2 * tile_m * (k0 + n_last) * 4     # x / out double buffers
                 + 2 * param_bytes                  # params (double-buffered)
                 + 2 * tile_m * max_width * 4)      # live intermediate h
    vmem_limit = int(min(max(2 * vmem_need, 32 << 20), 48 << 20))

    kernel = functools.partial(_mlp_fused_kernel,
                               activations=tuple(activations))

    out = pl.pallas_call(
        kernel,
        out_shape=jax.ShapeDtypeStruct((m_pad, n_last), x.dtype),
        grid_spec=pltpu.PrefetchScalarGridSpec(
            num_scalar_prefetch=0,
            grid=grid,
            in_specs=in_specs,
            out_specs=out_spec,
        ),
        compiler_params=pltpu.CompilerParams(
            dimension_semantics=("parallel",),
            vmem_limit_bytes=vmem_limit,
        ),
        cost_estimate=cost,
    )(*flat_inputs)

    if m_pad != m:
        out = out[:m]
    return out


class PlainMLPPallas:
    """Pallas equivalent of PlainMLP: Linear+act per consecutive size pair,
    `activation_func` on hidden layers, `final_activation_func` last."""

    def __init__(self, sizes, activation_func="relu",
                 final_activation_func="identity", key=None):
        if key is None:
            key = jax.random.PRNGKey(0)
        self.sizes = list(sizes)
        n_layers = len(sizes) - 1
        acts = []
        raw_params = []
        for j in range(n_layers):
            key, wk, bk = jax.random.split(key, 3)
            fan_in = sizes[j]
            bound = 1.0 / math.sqrt(fan_in)
            # deterministic init mimicking nn.Linear's uniform(-bound, bound);
            # weights stored as (in, out) == torch weight transposed.
            w = jax.random.uniform(
                wk, (sizes[j], sizes[j + 1]), jnp.float32, -bound, bound)
            b = jax.random.uniform(
                bk, (sizes[j + 1],), jnp.float32, -bound, bound)
            raw_params.append((w, b))
            acts.append(
                activation_func if j < n_layers - 1 else final_activation_func)

        # One-time (hoisted) kernel-ready parameter layout:
        #  - hidden feature dims zero-padded to multiples of 128 so every
        #    intermediate h is lane-dense (padded cols feed zero weight rows of
        #    the next layer -> numerics unchanged for any activation);
        #  - input dim and final output dim left unpadded (narrow HBM output);
        #  - biases stored as (1, n) rows.
        padded = []
        for j, (w, b) in enumerate(raw_params):
            in_dim, out_dim = w.shape
            in_pad = in_dim if j == 0 else _round_up(in_dim, 128)
            out_pad = out_dim if j == n_layers - 1 else _round_up(out_dim, 128)
            w_p = jnp.pad(w, ((0, in_pad - in_dim), (0, out_pad - out_dim)))
            b_p = jnp.pad(b, (0, out_pad - out_dim)).reshape(1, -1)
            padded.append((w_p, b_p))

        self.acts = tuple(acts)
        self.params = raw_params                 # unpadded, for reference use
        self._padded_params = tuple(padded)      # kernel-ready, built once
        self._num_cores = _num_tensorcores()

        acts_t = self.acts
        ncores = self._num_cores
        self._fwd = jax.jit(
            lambda x, p: plain_mlp_forward(x, p, acts_t, num_cores=ncores))

    def __call__(self, x):
        return self._fwd(x, self._padded_params)


def _reference_forward(mlp, x):
    # plain-JAX reference for sanity checking (unpadded params)
    for (w, b), act in zip(mlp.params, mlp.acts):
        x = _apply_activation(x @ w + b, act)
    return x


if __name__ == "__main__":
    key = jax.random.PRNGKey(0)
    key, xk = jax.random.split(key)

    sizes = [32, 64, 64, 16]          # input dim 32, two hidden 64, output 16
    batch = 16
    x = jax.random.normal(xk, (batch, sizes[0]), jnp.float32)

    mlp = PlainMLPPallas(sizes, activation_func="relu",
                         final_activation_func="identity", key=key)

    out = jax.block_until_ready(mlp(x))

    ref = _reference_forward(mlp, x)
    assert out.shape == (batch, sizes[-1])
    assert jnp.allclose(out, ref, atol=1e-4, rtol=1e-4), "mismatch vs JAX reference"

    print("KERNEL_OK")
</pallas_src>

<mosaic_0001>
module attributes {stable_mosaic.version = 11 : i64} {
  func.func @_mlp_fused_kernel(%arg0: i32, %arg1: memref<16x32xf32, #tpu.memory_space<vmem>>, %arg2: memref<32x128xf32, #tpu.memory_space<vmem>>, %arg3: memref<1x128xf32, #tpu.memory_space<vmem>>, %arg4: memref<128x128xf32, #tpu.memory_space<vmem>>, %arg5: memref<1x128xf32, #tpu.memory_space<vmem>>, %arg6: memref<128x16xf32, #tpu.memory_space<vmem>>, %arg7: memref<1x16xf32, #tpu.memory_space<vmem>>, %arg8: memref<16x16xf32, #tpu.memory_space<vmem>>) attributes {dimension_semantics = [#tpu.dimension_semantics<parallel>], iteration_bounds = array<i64: 1>, scalar_prefetch = 0 : i64, scratch_operands = 0 : i64, tpu.core_type = #tpu.core_type<tc>, window_params = [{transform_indices = @transform_0, window_bounds = array<i64: 16, 32>}, {pipeline_mode = #tpu.pipeline_mode<synchronous>, transform_indices = @transform_1, window_bounds = array<i64: 32, 128>}, {pipeline_mode = #tpu.pipeline_mode<synchronous>, transform_indices = @transform_2, window_bounds = array<i64: 1, 128>}, {pipeline_mode = #tpu.pipeline_mode<synchronous>, transform_indices = @transform_3, window_bounds = array<i64: 128, 128>}, {pipeline_mode = #tpu.pipeline_mode<synchronous>, transform_indices = @transform_4, window_bounds = array<i64: 1, 128>}, {pipeline_mode = #tpu.pipeline_mode<synchronous>, transform_indices = @transform_5, window_bounds = array<i64: 128, 16>}, {pipeline_mode = #tpu.pipeline_mode<synchronous>, transform_indices = @transform_6, window_bounds = array<i64: 1, 16>}, {transform_indices = @transform_7, window_bounds = array<i64: 16, 16>}]} {
    %c0 = arith.constant 0 : index
    %c0_0 = arith.constant 0 : index
    %0 = vector.load %arg1[%c0, %c0_0] : memref<16x32xf32, #tpu.memory_space<vmem>>, vector<16x32xf32>
    %c0_1 = arith.constant 0 : index
    %c0_2 = arith.constant 0 : index
    %1 = vector.load %arg2[%c0_1, %c0_2] : memref<32x128xf32, #tpu.memory_space<vmem>>, vector<32x128xf32>
    %c0_3 = arith.constant 0 : index
    %c0_4 = arith.constant 0 : index
    %2 = vector.load %arg3[%c0_3, %c0_4] : memref<1x128xf32, #tpu.memory_space<vmem>>, vector<1x128xf32>
    %cst = arith.constant dense<0.000000e+00> : vector<16x128xf32>
    %3 = tpu.matmul %0, %1, %cst {dimension_numbers = #tpu.dot_dimension_numbers<[1], [0], [0], [1], [0, 0, 1, 1], [], []>} : vector<16x32xf32>, vector<32x128xf32>, vector<16x128xf32> -> vector<16x128xf32>
    %4 = vector.broadcast %2 : vector<1x128xf32> to vector<16x128xf32>
    %5 = arith.addf %3, %4 : vector<16x128xf32>
    %cst_5 = arith.constant 0.000000e+00 : f32
    %6 = vector.broadcast %cst_5 : f32 to vector<16x128xf32>
    %7 = arith.maximumf %5, %6 : vector<16x128xf32>
    %c0_6 = arith.constant 0 : index
    %c0_7 = arith.constant 0 : index
    %8 = vector.load %arg4[%c0_6, %c0_7] : memref<128x128xf32, #tpu.memory_space<vmem>>, vector<128x128xf32>
    %c0_8 = arith.constant 0 : index
    %c0_9 = arith.constant 0 : index
    %9 = vector.load %arg5[%c0_8, %c0_9] : memref<1x128xf32, #tpu.memory_space<vmem>>, vector<1x128xf32>
    %cst_10 = arith.constant dense<0.000000e+00> : vector<16x128xf32>
    %10 = tpu.matmul %7, %8, %cst_10 {dimension_numbers = #tpu.dot_dimension_numbers<[1], [0], [0], [1], [0, 0, 1, 1], [], []>} : vector<16x128xf32>, vector<128x128xf32>, vector<16x128xf32> -> vector<16x128xf32>
    %11 = vector.broadcast %9 : vector<1x128xf32> to vector<16x128xf32>
    %12 = arith.addf %10, %11 : vector<16x128xf32>
    %cst_11 = arith.constant 0.000000e+00 : f32
    %13 = vector.broadcast %cst_11 : f32 to vector<16x128xf32>
    %14 = arith.maximumf %12, %13 : vector<16x128xf32>
    %c0_12 = arith.constant 0 : index
    %c0_13 = arith.constant 0 : index
    %15 = vector.load %arg6[%c0_12, %c0_13] : memref<128x16xf32, #tpu.memory_space<vmem>>, vector<128x16xf32>
    %c0_14 = arith.constant 0 : index
    %c0_15 = arith.constant 0 : index
    %16 = vector.load %arg7[%c0_14, %c0_15] : memref<1x16xf32, #tpu.memory_space<vmem>>, vector<1x16xf32>
    %cst_16 = arith.constant dense<0.000000e+00> : vector<16x16xf32>
    %17 = tpu.matmul %14, %15, %cst_16 {dimension_numbers = #tpu.dot_dimension_numbers<[1], [0], [0], [1], [0, 0, 1, 1], [], []>} : vector<16x128xf32>, vector<128x16xf32>, vector<16x16xf32> -> vector<16x16xf32>
    %18 = vector.broadcast %16 : vector<1x16xf32> to vector<16x16xf32>
    %19 = arith.addf %17, %18 : vector<16x16xf32>
    %c0_17 = arith.constant 0 : index
    %c0_18 = arith.constant 0 : index
    %20 = vector.load %arg8[%c0_17, %c0_18] : memref<16x16xf32, #tpu.memory_space<vmem>>, vector<16x16xf32>
    tpu.vector_store %arg8[%c0_17, %c0_18], %19 {strides = array<i32>} : memref<16x16xf32, #tpu.memory_space<vmem>>, vector<16x16xf32>,
    return
  }
  func.func @transform_0(%arg0: i32) -> (i32, i32) {
    %c0_i32 = arith.constant 0 : i32
    %c0_i32_0 = arith.constant 0 : i32
    return %arg0, %c0_i32 : i32, i32
  }
  func.func @transform_1(%arg0: i32) -> (i32, i32) {
    %c0_i32 = arith.constant 0 : i32
    %c0_i32_0 = arith.constant 0 : i32
    %c0_i32_1 = arith.constant 0 : i32
    return %c0_i32, %c0_i32_0 : i32, i32
  }
  func.func @transform_2(%arg0: i32) -> (i32, i32) {
    %c0_i32 = arith.constant 0 : i32
    %c0_i32_0 = arith.constant 0 : i32
    %c0_i32_1 = arith.constant 0 : i32
    return %c0_i32, %c0_i32_0 : i32, i32
  }
  func.func @transform_3(%arg0: i32) -> (i32, i32) {
    %c0_i32 = arith.constant 0 : i32
    %c0_i32_0 = arith.constant 0 : i32
    %c0_i32_1 = arith.constant 0 : i32
    return %c0_i32, %c0_i32_0 : i32, i32
  }
  func.func @transform_4(%arg0: i32) -> (i32, i32) {
    %c0_i32 = arith.constant 0 : i32
    %c0_i32_0 = arith.constant 0 : i32
    %c0_i32_1 = arith.constant 0 : i32
    return %c0_i32, %c0_i32_0 : i32, i32
  }
  func.func @transform_5(%arg0: i32) -> (i32, i32) {
    %c0_i32 = arith.constant 0 : i32
    %c0_i32_0 = arith.constant 0 : i32
    %c0_i32_1 = arith.constant 0 : i32
    return %c0_i32, %c0_i32_0 : i32, i32
  }
  func.func @transform_6(%arg0: i32) -> (i32, i32) {
    %c0_i32 = arith.constant 0 : i32
    %c0_i32_0 = arith.constant 0 : i32
    %c0_i32_1 = arith.constant 0 : i32
    return %c0_i32, %c0_i32_0 : i32, i32
  }
  func.func @transform_7(%arg0: i32) -> (i32, i32) {
    %c0_i32 = arith.constant 0 : i32
    %c0_i32_0 = arith.constant 0 : i32
    return %arg0, %c0_i32 : i32, i32
  }
}

</mosaic_0001>

<bundles_post_ra>
// kernel: _lambda_.1
= control target key start
LH: loop header
LB: loop body
LE: loop exit
PB: predicated region body
PF: predicated region fallthrough
CT: control target
= control target key end

     0   :  { %12 = vsyncpa [#allocation3], 0  ;;  %s795_s0 = inlined_call_operand.vmem [shape: f32[16,32], index: 0, kind: input, shape index: {}]   ;;  %s796_s1 = inlined_call_operand.hbm [shape: f32[32,128], index: 1, kind: input, shape index: {}]   ;;  %s797_s2 = inlined_call_operand.vmem [shape: f32[1,128], index: 2, kind: input, shape index: {}]   ;;  %s798_s3 = inlined_call_operand.vmem [shape: f32[128,128], index: 3, kind: input, shape index: {}]   ;;  %s799_s4 = inlined_call_operand.vmem [shape: f32[1,128], index: 4, kind: input, shape index: {}]   ;;  %s800_s5 = inlined_call_operand.vmem [shape: f32[128,16], index: 5, kind: input, shape index: {}]   ;;  %s801_s6 = inlined_call_operand.vmem [shape: f32[1,16], index: 6, kind: input, shape index: {}]   ;;  %s802_s7 = inlined_call_operand.hbm [shape: f32[16,16], index: 7, kind: output, shape index: {}]  }
   0x1   :  { %13 = vsyncpa [#allocation4], 0  ;;  %s608_s24 = smov [#allocation2]   ;;  %s560_s28 = scalar_lea.hbm %s796_s1, 512 }
   0x2   :  { %s21_s25 = sshll.u32 %s608_s24, 4  ;;  %p561_p0 = scmp.ne.s32.totalorder %s796_s1, %s560_s28  ;;  %s22_s25 = int_to_ptr.vmem [resolvable:$true] %s21_s25 }
   0x3   :  { %p564_p1 = scmp.lt.u32.totalorder %s560_s28, %s796_s1 }
   0x5   :  { %p566_p2 = pnand %p564_p1, %p561_p0 }
   0x7   :  { %569 = shalt.err (!%p566_p2)
}
   0x8   :  { %s570_s10 = scalar_lea.vmem %s22_s25, 512  ;;  %p575_p4 = scmp.lt.s32.totalorder %s22_s25, %s22_s25 }
   0x9   :  { %p571_p3 = scmp.ne.s32.totalorder %s22_s25, %s570_s10  ;;  %p576_p5 = scmp.lt.s32.totalorder %s570_s10, %s570_s10 }
   0xb   :  { %p577_p6 = por %p576_p5, %p575_p4 }
   0xd   :  { %p578_p7 = pnand %p577_p6, %p571_p3 }
   0xf   :  { %581 = shalt.err (!%p578_p7)
}
  0x10   :  { %s609_s11 = smov 128   ;;  %s610_s12 = smov 8  }
  0x11   :  { %27 = dma.hbm_to_vmem [thread:$0]  %s796_s1, 512, %s22_s25, [#allocation3], %s609_s11, %s609_s11, %s610_s12  }
  0x12   :  { %604 = dma.done.wait [#allocation3], 512  }
  0x13   :  { %605 = vsyncadd [#allocation3], 4294966784  ;;  %vm54_vm0 = vcmask 261120   ;;  %v43_v0 = vld [vmem:[#allocation2] sm:$0xff]  ;;  %v44_v1 = vld [vmem:[#allocation2 + $0x8] sm:$0xff]  ;;  %vm336_vm1 = vcmask 130048  }
  0x14   :  { %v45_v2 = vld [vmem:[#allocation2 + $0x10] sm:$0xff]  ;;  %v484_v3 = vpack.c.bf16 %v44_v1, %v43_v0  ;;  %v46_v4 = vld [vmem:[#allocation2 + $0x18] sm:$0xff]  ;;  %v41_v5 = vld [vmem:[%s795_s0] sm:$0xff] }
  0x15   :  { %v488_v6 = vpack.c.bf16 %v46_v4, %v45_v2  ;;  %411 = vmatprep.mubr.msk.f32.mxu0 %vm54_vm0, %v41_v5  ;;  %v138_v7 = vld [vmem:[%s798_s3] sm:$0xff]  ;;  %v139_v8 = vld [vmem:[%s798_s3 + $0x8] sm:$0xff]  ;;  %v140_v9 = vld [vmem:[%s798_s3 + $0x10] sm:$0xff] }
  0x16   :  { %485 = vmatprep.subr.bf16.mxu0 %v484_v3  ;;  %v492_v10 = vpack.c.bf16 %v139_v8, %v138_v7  ;;  %v141_v11 = vld [vmem:[%s798_s3 + $0x18] sm:$0xff]  ;;  %v142_v13 = vld [vmem:[%s798_s3 + $0x20] sm:$0xff]  ;;  %v143_v14 = vld [vmem:[%s798_s3 + $0x28] sm:$0xff] }
  0x17   :  { %487 = vmatpush3.bf16.msra.mxu0 %v484_v3  ;;  %v496_v12 = vpack.c.bf16 %v141_v11, %v140_v9  ;;  %v500_v15 = vpack.c.bf16 %v143_v14, %v142_v13  ;;  %v42_v16 = vld [vmem:[%s795_s0 + $0x8] sm:$0xff]  ;;  %v144_v17 = vld [vmem:[%s798_s3 + $0x30] sm:$0xff]  ;;  %v145_v18 = vld [vmem:[%s798_s3 + $0x38] sm:$0xff] }
  0x18   :  { %489 = vmatprep.subr.bf16.mxu0 %v488_v6  ;;  %493 = vmatprep.subr.bf16.mxu1 %v492_v10  ;;  %v504_v19 = vpack.c.bf16 %v145_v18, %v144_v17  ;;  %v146_v20 = vld [vmem:[%s798_s3 + $0x40] sm:$0xff]  ;;  %v147_v21 = vld [vmem:[%s798_s3 + $0x48] sm:$0xff]  ;;  %v148_v23 = vld [vmem:[%s798_s3 + $0x50] sm:$0xff] }
  0x19   :  { %495 = vmatpush3.bf16.msra.mxu1 %v492_v10  ;;  %v508_v22 = vpack.c.bf16 %v147_v21, %v146_v20  ;;  %v149_v24 = vld [vmem:[%s798_s3 + $0x58] sm:$0xff]  ;;  %v150_v26 = vld [vmem:[%s798_s3 + $0x60] sm:$0xff]  ;;  %v151_v27 = vld [vmem:[%s798_s3 + $0x68] sm:$0xff] }
  0x1a   :  { %497 = vmatprep.subr.bf16.mxu1 %v496_v12  ;;  %v512_v25 = vpack.c.bf16 %v149_v24, %v148_v23  ;;  %v516_v28 = vpack.c.bf16 %v151_v27, %v150_v26  ;;  %v152_v29 = vld [vmem:[%s798_s3 + $0x70] sm:$0xff]  ;;  %v153_v30 = vld [vmem:[%s798_s3 + $0x78] sm:$0xff]  ;;  %v238_v32 = vld [vmem:[%s800_s5] sm:$0xff] }
  0x1b   :  { %491 = vmatpush3.bf16.msra.mxu0 %v488_v6  ;;  %v520_v31 = vpack.c.bf16 %v153_v30, %v152_v29  ;;  %v239_v33 = vld [vmem:[%s800_s5 + $0x8] sm:$0xff]  ;;  %v240_v34 = vld [vmem:[%s800_s5 + $0x10] sm:$0xff]  ;;  %v241_v36 = vld [vmem:[%s800_s5 + $0x18] sm:$0xff] }
  0x1c   :  { %v524_v35 = vpack.c.bf16 %v239_v33, %v238_v32  ;;  %v528_v37 = vpack.c.bf16 %v241_v36, %v240_v34  ;;  %v242_v38 = vld [vmem:[%s800_s5 + $0x20] sm:$0xff]  ;;  %v243_v39 = vld [vmem:[%s800_s5 + $0x28] sm:$0xff]  ;;  %v244_v41 = vld [vmem:[%s800_s5 + $0x30] sm:$0xff] }
  0x1d   :  { %499 = vmatpush3.bf16.msra.mxu1 %v496_v12  ;;  %v532_v40 = vpack.c.bf16 %v243_v39, %v242_v38  ;;  %v245_v42 = vld [vmem:[%s800_s5 + $0x38] sm:$0xff]  ;;  %v246_v44 = vld [vmem:[%s800_s5 + $0x40] sm:$0xff]  ;;  %v247_v45 = vld [vmem:[%s800_s5 + $0x48] sm:$0xff] }
  0x1e   :  { %412 = vmatmul.mubr.msk.f32.vlgmr.msra.gmra.mrb[0].mxu0 %vm54_vm0, %v42_v16  ;;  %501 = vmatprep.subr.bf16.mxu1 %v500_v15  ;;  %v536_v43 = vpack.c.bf16 %v245_v42, %v244_v41  ;;  %v540_v46 = vpack.c.bf16 %v247_v45, %v246_v44  ;;  %v248_v47 = vld [vmem:[%s800_s5 + $0x50] sm:$0xff]  ;;  %v249_v48 = vld [vmem:[%s800_s5 + $0x58] sm:$0xff]  ;;  %v250_v50 = vld [vmem:[%s800_s5 + $0x60] sm:$0xff] }
  0x1f   :  { %525 = vmatprep.subr.bf16.mxu0 %v524_v35  ;;  %v544_v49 = vpack.c.bf16 %v249_v48, %v248_v47  ;;  %v251_v51 = vld [vmem:[%s800_s5 + $0x68] sm:$0xff]  ;;  %v356_v53 = vld [vmem:[%s797_s2] ss:$0 sm:$0xff]  ;;  %v252_v60 = vld [vmem:[%s800_s5 + $0x70] sm:$0xff] }
  0x20   :  { %527 = vmatpush3.bf16.msra.mxu0 %v524_v35  ;;  %v548_v52 = vpack.c.bf16 %v251_v51, %v250_v50  ;;  %v253_v61 = vld [vmem:[%s800_s5 + $0x78] sm:$0xff]  ;;  %v359_v63 = vld [vmem:[%s799_s4] ss:$0 sm:$0xff]  ;;  %s611_s5 = smov [#allocation5]  }
  0x21   :  { %503 = vmatpush3.bf16.msra.mxu1 %v500_v15  ;;  %529 = vmatprep.subr.bf16.mxu0 %v528_v37  ;;  %v552_v62 = vpack.c.bf16 %v253_v61, %v252_v60  ;;  %v360_v6 = vld [vmem:[%s801_s6] ss:$0 sm:$0xff]  ;;  %s344_s17 = sshll.u32 %s611_s5, 4  ;;  %s345_s17 = int_to_ptr.vmem [resolvable:$true] %s344_s17 }
  0x22   :  { %505 = vmatprep.subr.bf16.mxu1 %v504_v19  ;;  %s582_s4 = scalar_lea.vmem %s345_s17, 256  ;;  %p587_p9 = scmp.lt.s32.totalorder %s345_s17, %s345_s17 }
  0x23   :  { %p583_p8 = scmp.ne.s32.totalorder %s345_s17, %s582_s4  ;;  %p588_p10 = scmp.lt.s32.totalorder %s582_s4, %s582_s4 }
  0x24   :  { %531 = vmatpush3.bf16.msra.mxu0 %v528_v37 }
  0x25   :  { %507 = vmatpush3.bf16.msra.mxu1 %v504_v19  ;;  %533 = vmatprep.subr.bf16.mxu0 %v532_v40  ;;  %p589_p11 = por %p588_p10, %p587_p9 }
  0x26   :  { %509 = vmatprep.subr.bf16.mxu1 %v508_v22 }
  0x27   :  { %p590_p12 = pnand %p589_p11, %p583_p8 }
  0x28   :  { %535 = vmatpush3.bf16.msra.mxu0 %v532_v40 }
  0x29   :  { %511 = vmatpush3.bf16.msra.mxu1 %v508_v22  ;;  %537 = vmatprep.subr.bf16.mxu0 %v536_v43 }
  0x2a   :  { %513 = vmatprep.subr.bf16.mxu1 %v512_v25 }
  0x2c   :  { %539 = vmatpush3.bf16.msra.mxu0 %v536_v43 }
  0x2d   :  { %515 = vmatpush3.bf16.msra.mxu1 %v512_v25  ;;  %541 = vmatprep.subr.bf16.mxu0 %v540_v46 }
  0x2e   :  { %517 = vmatprep.subr.bf16.mxu1 %v516_v28 }
  0x30   :  { %543 = vmatpush3.bf16.msra.mxu0 %v540_v46 }
  0x31   :  { %519 = vmatpush3.bf16.msra.mxu1 %v516_v28  ;;  %545 = vmatprep.subr.bf16.mxu0 %v544_v49 }
  0x32   :  { %521 = vmatprep.subr.bf16.mxu1 %v520_v31 }
  0x34   :  { %547 = vmatpush3.bf16.msra.mxu0 %v544_v49 }
  0x35   :  { %523 = vmatpush3.bf16.msra.mxu1 %v520_v31  ;;  %549 = vmatprep.subr.bf16.mxu0 %v548_v52 }
  0x38   :  { %551 = vmatpush3.bf16.msra.mxu0 %v548_v52 }
  0x39   :  { %553 = vmatprep.subr.bf16.mxu0 %v552_v62 }
  0x3c   :  { %555 = vmatpush3.bf16.msra.mxu0 %v552_v62 }
  0xf1   :  { %v413_v54 = vpop.f32.mrb[0].mxu0 }
  0xf2   :  { %v133_v55 = vadd.f32 %v413_v54, %v356_v53  ;;  %v127_v56 = vpop.f32.mrb[1].mxu0 }
  0xf3   :  { %v128_v57 = vadd.f32 %v356_v53, %v127_v56 }
  0xf4   :  { %v137_v59 = vmax.f32 %v133_v55, 0.0 }
  0xf5   :  { %v136_v58 = vmax.f32 %v128_v57, 0.0 }
  0xf7   :  { %446 = vmatprep.mubr.f32.mxu1 %v136_v58 }
  0xf8   :  { %447 = vmatmul.mubr.f32.vlgmr.msra.gmra.mrb[0].mxu1 %v137_v59 }
 0x1cb   :  { %v448_v0 = vpop.f32.mrb[0].mxu1 }
 0x1cc   :  { %v233_v1 = vadd.f32 %v448_v0, %v359_v63  ;;  %v227_v2 = vpop.f32.mrb[1].mxu1 }
 0x1cd   :  { %v228_v3 = vadd.f32 %v359_v63, %v227_v2 }
 0x1ce   :  { %v237_v5 = vmax.f32 %v233_v1, 0.0 }
 0x1cf   :  { %v236_v4 = vmax.f32 %v228_v3, 0.0 }
 0x1d1   :  { %481 = vmatprep.mubr.f32.mxu0 %v236_v4 }
 0x1d2   :  { %482 = vmatmul.mubr.f32.vlgmr.msra.gmra.mrb[2].mxu0 %v237_v5 }
 0x2a5   :  { %v483_v7 = vpop.f32.mrb[2].mxu0 }
 0x2a6   :  { %v333_v8 = vadd.f32 %v483_v7, %v360_v6  ;;  %v327_v9 = vpop.f32.mrb[3].mxu0 }
 0x2a7   :  { %v328_v10 = vadd.f32 %v360_v6, %v327_v9 }
 0x2a8   :  { %338 = vst.msk [vmem:[#allocation5 + $0x8] sm:$0xff] %vm336_vm1, %v333_v8 }
 0x2a9   :  { %337 = vst.msk [vmem:[#allocation5] sm:$0xff] %vm336_vm1, %v328_v10 }
 0x2aa   :  { %593 = shalt.err (!%p590_p12)
}
 0x2ab   :  { %s594_s6 = scalar_lea.hbm %s802_s7, 256 }
 0x2ac   :  { %p595_p13 = scmp.ne.s32.totalorder %s802_s7, %s594_s6  ;;  %p598_p0 = scmp.lt.u32.totalorder %s594_s6, %s802_s7 }
 0x2ae   :  { %p600_p1 = pnand %p598_p0, %p595_p13 }
 0x2b0   :  { %603 = shalt.err (!%p600_p1)
}
 0x2b1   :  { %350 = dma.vmem_to_hbm [thread:$0]  %s345_s17, 256, %s802_s7, [#allocation4], %s609_s11, %s609_s11, %s610_s12  }
 0x2b2   :  { %606 = dma.done.wait [#allocation4], 256  }
 0x2b3   :  { %607 = vsyncadd [#allocation4], 4294967040 }
 0x2b4   :  { %354 = vsyncpa [#allocation3], 1 }
 0x2b5   :  { %355 = vsyncpa [#allocation4], 1 }

</bundles_post_ra>
